<compile_context>
chip_gen: v7x
topology: tpu7x:2x2x1
jax: 0.10.0
libtpu: 0.0.40
codegen_flags: <defaults>
</compile_context>

<pallas_src>
import functools

import jax
import jax.numpy as jnp
from jax import lax
from jax.experimental import pallas as pl
from jax.experimental.pallas import tpu as pltpu


# Scoped-VMEM budget: above v6e's 32 MiB default scoped limit (so large lane-dense
# tiles stay pipelined), below v7x's 64 MiB physical VMEM, far below v5e/v6e 128 MiB.
_VMEM_LIMIT_BYTES = 48 * 1024 * 1024


def _pick_tile(n, max_tile, multiple=8):
    """Largest divisor of n that is <= max_tile and a multiple of `multiple`.
    Falls back to n (the full dim, always legal for BlockSpec) if none exists."""
    if n <= max_tile:
        return n
    for t in range(max_tile, multiple - 1, -1):
        if n % t == 0 and t % multiple == 0:
            return t
    return n


# ---------------------------------------------------------------------------
# Scaled dot-product attention kernel (heads packed on the feature axis)
# ---------------------------------------------------------------------------
def _sdpa_kernel(*refs, n_head, d_k, d_v, inv_temperature, mxu_dtype, has_mask):
    if has_mask:
        q_ref, k_ref, v_ref, mask_ref, out_ref, attn_ref = refs
    else:
        q_ref, k_ref, v_ref, out_ref, attn_ref = refs
        mask_ref = None
    # q_ref [tq, H*d_k], k_ref [Lk, H*d_k], v_ref [Lk, H*d_v],
    # mask_ref [tq, Lk] int8 (nonzero == masked),
    # out_ref [tq, H*d_v], attn_ref [H, tq, Lk].

    outs = []
    for h in range(n_head):                         # static unroll over heads
        # 1/temperature folded into q (tq*d_k muls instead of tq*Lk), in f32.
        q_h = (q_ref[:, h * d_k:(h + 1) * d_k].astype(jnp.float32)
               * inv_temperature).astype(mxu_dtype)
        k_h = k_ref[:, h * d_k:(h + 1) * d_k].astype(mxu_dtype)
        v_h = v_ref[:, h * d_v:(h + 1) * d_v].astype(mxu_dtype)

        # scores = q @ k^T : contract the LAST dim of both operands so the MXU
        # consumes K directly (no XLU transpose); f32 accumulation.
        scores = lax.dot_general(
            q_h, k_h,
            dimension_numbers=(((1,), (1,)), ((), ())),
            preferred_element_type=jnp.float32)     # [tq, Lk] f32

        if mask_ref is not None:
            # masked_fill(mask, -inf), as in the torch module
            scores = jnp.where(mask_ref[...] != 0, -jnp.inf, scores)

        # numerically-stable softmax over the key axis (f32)
        m = jnp.max(scores, axis=-1, keepdims=True)
        p = jnp.exp(scores - m)
        denom = jnp.sum(p, axis=-1, keepdims=True)
        inv = pl.reciprocal(denom, approx=True)     # EUP vrcp (otherwise-idle slot)
        inv = inv * (2.0 - denom * inv)             # one Newton step -> ~exact
        attn = p * inv                              # [tq, Lk] f32

        attn_ref[h] = attn.astype(attn_ref.dtype)
        # output = attn @ v ; MXU in mxu_dtype, accumulate f32.
        outs.append(jnp.dot(attn.astype(mxu_dtype), v_h,
                            preferred_element_type=jnp.float32))

    # single lane-dense store of all heads
    out_ref[...] = jnp.concatenate(outs, axis=-1).astype(out_ref.dtype)


def scaled_dot_product_attention(q, k, v, mask, temperature, *,
                                 n_head, d_k, d_v, mxu_dtype=None):
    """q: [B, Lq, H*d_k], k: [B, Lk, H*d_k], v: [B, Lk, H*d_v] (heads packed on
    the feature axis — no transposes needed), mask: [B, Lq, Lk] (nonzero ==
    masked) or None.  Returns (out [B, Lq, H*d_v], attn [H, B, Lq, Lk])."""
    B, Lq, Dq = q.shape
    _, Lk, _ = k.shape
    assert Dq == n_head * d_k
    mxu = jnp.dtype(mxu_dtype) if mxu_dtype is not None else q.dtype

    # Query-axis tiling: largest divisor <= 256 (<=128 for long key axes so the
    # f32 softmax temporaries + attn tile stay inside v7x's 64 MiB VMEM).
    max_tq = 128 if Lk >= 2048 else 256
    tq = _pick_tile(Lq, max_tq)
    n_q = Lq // tq

    kernel = functools.partial(
        _sdpa_kernel, n_head=n_head, d_k=d_k, d_v=d_v,
        inv_temperature=1.0 / float(temperature), mxu_dtype=mxu,
        has_mask=mask is not None)

    in_specs = [
        pl.BlockSpec((pl.Squeezed(), tq, n_head * d_k), lambda b, i: (b, i, 0)),
        pl.BlockSpec((pl.Squeezed(), Lk, n_head * d_k), lambda b, i: (b, 0, 0)),
        pl.BlockSpec((pl.Squeezed(), Lk, n_head * d_v), lambda b, i: (b, 0, 0)),
    ]
    args = [q, k, v]
    if mask is not None:
        # int8 mask indexed per-batch in the BlockSpec: never replicated over
        # heads and 4x fewer bytes than f32.
        in_specs.append(
            pl.BlockSpec((pl.Squeezed(), tq, Lk), lambda b, i: (b, i, 0)))
        args.append(mask.astype(jnp.int8))

    out, attn = pl.pallas_call(
        kernel,
        out_shape=(
            jax.ShapeDtypeStruct((B, Lq, n_head * d_v), q.dtype),
            jax.ShapeDtypeStruct((n_head, B, Lq, Lk), q.dtype),
        ),
        grid=(B, n_q),
        in_specs=in_specs,
        out_specs=(
            pl.BlockSpec((pl.Squeezed(), tq, n_head * d_v), lambda b, i: (b, i, 0)),
            pl.BlockSpec((n_head, pl.Squeezed(), tq, Lk), lambda b, i: (0, b, i, 0)),
        ),
        compiler_params=pltpu.CompilerParams(
            dimension_semantics=("parallel", "parallel"),
            vmem_limit_bytes=_VMEM_LIMIT_BYTES,
        ),
    )(*args)
    return out, attn


# ---------------------------------------------------------------------------
# Row-tiled linear (x @ W + b) kernel (W stored as [Din, Dout] = nn.Linear W^T)
# ---------------------------------------------------------------------------
def _linear_kernel(x_ref, w_ref, b_ref, o_ref, *, mxu_dtype):
    x = x_ref[...].astype(mxu_dtype)
    w = w_ref[...].astype(mxu_dtype)
    acc = jnp.dot(x, w, preferred_element_type=jnp.float32)
    acc = acc + b_ref[...].astype(jnp.float32)
    o_ref[...] = acc.astype(o_ref.dtype)


def linear(x, w, b, *, mxu_dtype=None, max_tm=256):
    """x: [M, Din], w: [Din, Dout], b: [Dout] -> [M, Dout]."""
    M, Din = x.shape
    Din2, Dout = w.shape
    assert Din == Din2
    mxu = jnp.dtype(mxu_dtype) if mxu_dtype is not None else x.dtype
    TM = _pick_tile(M, max_tm)
    kernel = functools.partial(_linear_kernel, mxu_dtype=mxu)
    return pl.pallas_call(
        kernel,
        out_shape=jax.ShapeDtypeStruct((M, Dout), x.dtype),
        grid=(M // TM,),
        in_specs=[
            pl.BlockSpec((TM, Din), lambda i: (i, 0)),
            pl.BlockSpec((Din, Dout), lambda i: (0, 0)),
            pl.BlockSpec((1, Dout), lambda i: (0, 0)),
        ],
        out_specs=pl.BlockSpec((TM, Dout), lambda i: (i, 0)),
        compiler_params=pltpu.CompilerParams(
            dimension_semantics=("parallel",),
            vmem_limit_bytes=_VMEM_LIMIT_BYTES,
        ),
    )(x, w, b.reshape(1, Dout))


# ---------------------------------------------------------------------------
# Fused fc linear + residual add + LayerNorm kernel (LN in the fc epilogue)
# ---------------------------------------------------------------------------
def _fc_add_layernorm_kernel(x_ref, w_ref, b_ref, res_ref, g_ref, beta_ref,
                             o_ref, *, eps, mxu_dtype):
    x = x_ref[...].astype(mxu_dtype)
    w = w_ref[...].astype(mxu_dtype)
    y = jnp.dot(x, w, preferred_element_type=jnp.float32)
    y = y + b_ref[...].astype(jnp.float32)
    s = y + res_ref[...].astype(jnp.float32)          # residual add
    mean = jnp.mean(s, axis=-1, keepdims=True)
    c = s - mean
    var = jnp.mean(c * c, axis=-1, keepdims=True)
    ln = c * lax.rsqrt(var + eps)
    ln = ln * g_ref[...].astype(jnp.float32) + beta_ref[...].astype(jnp.float32)
    o_ref[...] = ln.astype(o_ref.dtype)


def fc_add_layer_norm(x, w, b, residual, gamma, beta, *, eps=1e-5,
                      mxu_dtype=None, max_tm=256):
    M, Din = x.shape
    Din2, Dout = w.shape
    assert Din == Din2 and residual.shape == (M, Dout)
    mxu = jnp.dtype(mxu_dtype) if mxu_dtype is not None else x.dtype
    TM = _pick_tile(M, max_tm)
    kernel = functools.partial(_fc_add_layernorm_kernel, eps=float(eps),
                               mxu_dtype=mxu)
    return pl.pallas_call(
        kernel,
        out_shape=jax.ShapeDtypeStruct((M, Dout), x.dtype),
        grid=(M // TM,),
        in_specs=[
            pl.BlockSpec((TM, Din), lambda i: (i, 0)),
            pl.BlockSpec((Din, Dout), lambda i: (0, 0)),
            pl.BlockSpec((1, Dout), lambda i: (0, 0)),
            pl.BlockSpec((TM, Dout), lambda i: (i, 0)),
            pl.BlockSpec((1, Dout), lambda i: (0, 0)),
            pl.BlockSpec((1, Dout), lambda i: (0, 0)),
        ],
        out_specs=pl.BlockSpec((TM, Dout), lambda i: (i, 0)),
        compiler_params=pltpu.CompilerParams(
            dimension_semantics=("parallel",),
            vmem_limit_bytes=_VMEM_LIMIT_BYTES,
        ),
    )(x, w, b.reshape(1, Dout), residual, gamma.reshape(1, Dout),
      beta.reshape(1, Dout))


# ---------------------------------------------------------------------------
# MultiHeadAttention forward (eval mode)
# ---------------------------------------------------------------------------
def multi_head_attention(params, q_in, k_in, v_in, mask, *, n_head, d_k, d_v,
                         mxu_dtype=None):
    B, Lq, d_model = q_in.shape
    _, Lk, _ = k_in.shape
    _, Lv, _ = v_in.shape
    assert Lk == Lv

    residual2d = q_in.reshape(B * Lq, d_model)

    if q_in is k_in and k_in is v_in:
        # Self-attention: one fused QKV projection (reads X from HBM once).
        w_qkv = jnp.concatenate(
            [params["w_qs"], params["w_ks"], params["w_vs"]], axis=1)
        b_qkv = jnp.concatenate(
            [params["b_qs"], params["b_ks"], params["b_vs"]])
        qkv = linear(residual2d, w_qkv, b_qkv, mxu_dtype=mxu_dtype)
        nqk = n_head * d_k
        q2, k2, v2 = qkv[:, :nqk], qkv[:, nqk:2 * nqk], qkv[:, 2 * nqk:]
    else:
        q2 = linear(q_in.reshape(B * Lq, d_model), params["w_qs"],
                    params["b_qs"], mxu_dtype=mxu_dtype)
        k2 = linear(k_in.reshape(B * Lk, d_model), params["w_ks"],
                    params["b_ks"], mxu_dtype=mxu_dtype)
        v2 = linear(v_in.reshape(B * Lv, d_model), params["w_vs"],
                    params["b_vs"], mxu_dtype=mxu_dtype)

    # Heads stay packed on the feature axis -> no XLA transposes anywhere; the
    # SDPA kernel slices per-head columns at static offsets.
    q3 = q2.reshape(B, Lq, n_head * d_k)
    k3 = k2.reshape(B, Lk, n_head * d_k)
    v3 = v2.reshape(B, Lv, n_head * d_v)

    temperature = float(d_k) ** 0.5
    out, attn = scaled_dot_product_attention(
        q3, k3, v3, mask, temperature,
        n_head=n_head, d_k=d_k, d_v=d_v, mxu_dtype=mxu_dtype)
    # [H, B, Lq, Lk] -> torch layout [H*B, Lq, Lk] is a free (contiguous) reshape.
    attn = attn.reshape(n_head * B, Lq, Lk)

    # fc + dropout(identity, eval) + residual add + LayerNorm, all in one kernel.
    out2d = out.reshape(B * Lq, n_head * d_v)
    y = fc_add_layer_norm(out2d, params["w_fc"], params["b_fc"], residual2d,
                          params["ln_g"], params["ln_b"], mxu_dtype=mxu_dtype)
    return y.reshape(B, Lq, d_model), attn


def init_params(key, n_head, d_model, d_k, d_v, dtype=jnp.float32):
    ks = jax.random.split(key, 8)
    std_qk = (2.0 / (d_model + d_k)) ** 0.5
    std_v = (2.0 / (d_model + d_v)) ** 0.5
    std_fc = (2.0 / (n_head * d_v + d_model)) ** 0.5
    return {
        "w_qs": (std_qk * jax.random.normal(ks[0], (d_model, n_head * d_k))).astype(dtype),
        "b_qs": (0.1 * jax.random.normal(ks[1], (n_head * d_k,))).astype(dtype),
        "w_ks": (std_qk * jax.random.normal(ks[2], (d_model, n_head * d_k))).astype(dtype),
        "b_ks": (0.1 * jax.random.normal(ks[3], (n_head * d_k,))).astype(dtype),
        "w_vs": (std_v * jax.random.normal(ks[4], (d_model, n_head * d_v))).astype(dtype),
        "b_vs": (0.1 * jax.random.normal(ks[5], (n_head * d_v,))).astype(dtype),
        "w_fc": (std_fc * jax.random.normal(ks[6], (n_head * d_v, d_model))).astype(dtype),
        "b_fc": (0.1 * jax.random.normal(ks[7], (d_model,))).astype(dtype),
        "ln_g": jnp.ones((d_model,), dtype),
        "ln_b": jnp.zeros((d_model,), dtype),
    }


# ---------------------------------------------------------------------------
# Pure-JAX reference (mirrors the torch module math)
# ---------------------------------------------------------------------------
def _reference_mha(params, q_in, k_in, v_in, mask, *, n_head, d_k, d_v):
    B, Lq, d_model = q_in.shape
    _, Lk, _ = k_in.shape
    residual = q_in
    q = q_in.reshape(B * Lq, d_model) @ params["w_qs"] + params["b_qs"]
    k = k_in.reshape(B * Lk, d_model) @ params["w_ks"] + params["b_ks"]
    v = v_in.reshape(B * Lk, d_model) @ params["w_vs"] + params["b_vs"]
    q = q.reshape(B, Lq, n_head, d_k).transpose(2, 0, 1, 3).reshape(n_head * B, Lq, d_k)
    k = k.reshape(B, Lk, n_head, d_k).transpose(2, 0, 1, 3).reshape(n_head * B, Lk, d_k)
    v = v.reshape(B, Lk, n_head, d_v).transpose(2, 0, 1, 3).reshape(n_head * B, Lk, d_v)
    mask_h = jnp.tile(mask, (n_head, 1, 1))
    temperature = float(d_k) ** 0.5
    scores = jnp.einsum("bqd,bkd->bqk", q, k) / temperature
    scores = jnp.where(mask_h, -jnp.inf, scores)
    attn = jax.nn.softmax(scores, axis=-1)
    out = jnp.einsum("bqk,bkd->bqd", attn, v)
    out = out.reshape(n_head, B, Lq, d_v).transpose(1, 2, 0, 3).reshape(B, Lq, n_head * d_v)
    out = out @ params["w_fc"] + params["b_fc"]
    s = out + residual
    mean = s.mean(-1, keepdims=True)
    var = ((s - mean) ** 2).mean(-1, keepdims=True)
    y = (s - mean) / jnp.sqrt(var + 1e-5) * params["ln_g"] + params["ln_b"]
    return y, attn


if __name__ == "__main__":
    key = jax.random.PRNGKey(0)
    kp, kq, kk, kv = jax.random.split(key, 4)

    B, L, d_model = 2, 8, 32
    n_head, d_k, d_v = 2, 16, 16

    params = init_params(kp, n_head, d_model, d_k, d_v)
    q = jax.random.normal(kq, (B, L, d_model), dtype=jnp.float32)
    k = jax.random.normal(kk, (B, L, d_model), dtype=jnp.float32)
    v = jax.random.normal(kv, (B, L, d_model), dtype=jnp.float32)

    # boolean mask (True == masked): mask out the last two keys of batch 1
    key_valid = jnp.array([[1, 1, 1, 1, 1, 1, 1, 1],
                           [1, 1, 1, 1, 1, 1, 0, 0]], dtype=bool)   # [B, Lk]
    mask = jnp.broadcast_to(~key_valid[:, None, :], (B, L, L))      # [B, Lq, Lk]

    # 1) f32, distinct q/k/v (general path) — tight check against reference
    out, attn = multi_head_attention(params, q, k, v, mask,
                                     n_head=n_head, d_k=d_k, d_v=d_v)
    jax.block_until_ready((out, attn))
    ref_out, ref_attn = _reference_mha(params, q, k, v, mask,
                                       n_head=n_head, d_k=d_k, d_v=d_v)
    assert out.shape == (B, L, d_model)
    assert attn.shape == (n_head * B, L, L)
    assert jnp.allclose(attn, ref_attn, atol=2e-5, rtol=2e-5)
    assert jnp.allclose(out, ref_out, atol=2e-5, rtol=2e-5)

    # 2) f32, self-attention (fused single-QKV projection path) — tight check
    out_s, attn_s = multi_head_attention(params, q, q, q, mask,
                                         n_head=n_head, d_k=d_k, d_v=d_v)
    jax.block_until_ready((out_s, attn_s))
    ref_out_s, ref_attn_s = _reference_mha(params, q, q, q, mask,
                                           n_head=n_head, d_k=d_k, d_v=d_v)
    assert jnp.allclose(attn_s, ref_attn_s, atol=2e-5, rtol=2e-5)
    assert jnp.allclose(out_s, ref_out_s, atol=2e-5, rtol=2e-5)

    # 3) bf16 inputs + bf16 MXU operands (native MXU rate) — loose check
    params_bf = jax.tree_util.tree_map(lambda a: a.astype(jnp.bfloat16), params)
    out_bf, attn_bf = multi_head_attention(
        params_bf, q.astype(jnp.bfloat16), k.astype(jnp.bfloat16),
        v.astype(jnp.bfloat16), mask,
        n_head=n_head, d_k=d_k, d_v=d_v, mxu_dtype=jnp.bfloat16)
    jax.block_until_ready((out_bf, attn_bf))
    assert out_bf.dtype == jnp.bfloat16 and out_bf.shape == (B, L, d_model)
    out_bf32 = out_bf.astype(jnp.float32)
    assert bool(jnp.all(jnp.isfinite(out_bf32)))
    assert jnp.allclose(out_bf32, ref_out, atol=0.2, rtol=0.1)

    print("KERNEL_OK")
</pallas_src>

<mosaic_0001>
module attributes {stable_mosaic.version = 11 : i64} {
  func.func @_linear_kernel(%arg0: i32, %arg1: memref<16x32xf32, #tpu.memory_space<vmem>>, %arg2: memref<32x32xf32, #tpu.memory_space<vmem>>, %arg3: memref<1x32xf32, #tpu.memory_space<vmem>>, %arg4: memref<16x32xf32, #tpu.memory_space<vmem>>) attributes {dimension_semantics = [#tpu.dimension_semantics<parallel>], iteration_bounds = array<i64: 1>, scalar_prefetch = 0 : i64, scratch_operands = 0 : i64, tpu.core_type = #tpu.core_type<tc>, window_params = [{transform_indices = @transform_0, window_bounds = array<i64: 16, 32>}, {pipeline_mode = #tpu.pipeline_mode<synchronous>, transform_indices = @transform_1, window_bounds = array<i64: 32, 32>}, {pipeline_mode = #tpu.pipeline_mode<synchronous>, transform_indices = @transform_2, window_bounds = array<i64: 1, 32>}, {transform_indices = @transform_3, window_bounds = array<i64: 16, 32>}]} {
    %c0 = arith.constant 0 : index
    %c0_0 = arith.constant 0 : index
    %0 = vector.load %arg1[%c0, %c0_0] : memref<16x32xf32, #tpu.memory_space<vmem>>, vector<16x32xf32>
    %c0_1 = arith.constant 0 : index
    %c0_2 = arith.constant 0 : index
    %1 = vector.load %arg2[%c0_1, %c0_2] : memref<32x32xf32, #tpu.memory_space<vmem>>, vector<32x32xf32>
    %cst = arith.constant dense<0.000000e+00> : vector<16x32xf32>
    %2 = tpu.matmul %0, %1, %cst {dimension_numbers = #tpu.dot_dimension_numbers<[1], [0], [0], [1], [0, 0, 1, 1], [], []>} : vector<16x32xf32>, vector<32x32xf32>, vector<16x32xf32> -> vector<16x32xf32>
    %c0_3 = arith.constant 0 : index
    %c0_4 = arith.constant 0 : index
    %3 = vector.load %arg3[%c0_3, %c0_4] : memref<1x32xf32, #tpu.memory_space<vmem>>, vector<1x32xf32>
    %4 = vector.broadcast %3 : vector<1x32xf32> to vector<16x32xf32>
    %5 = arith.addf %2, %4 : vector<16x32xf32>
    %c0_5 = arith.constant 0 : index
    %c0_6 = arith.constant 0 : index
    %6 = vector.load %arg4[%c0_5, %c0_6] : memref<16x32xf32, #tpu.memory_space<vmem>>, vector<16x32xf32>
    tpu.vector_store %arg4[%c0_5, %c0_6], %5 {strides = array<i32>} : memref<16x32xf32, #tpu.memory_space<vmem>>, vector<16x32xf32>,
    return
  }
  func.func @transform_0(%arg0: i32) -> (i32, i32) {
    %c0_i32 = arith.constant 0 : i32
    %c0_i32_0 = arith.constant 0 : i32
    return %arg0, %c0_i32 : i32, i32
  }
  func.func @transform_1(%arg0: i32) -> (i32, i32) {
    %c0_i32 = arith.constant 0 : i32
    %c0_i32_0 = arith.constant 0 : i32
    %c0_i32_1 = arith.constant 0 : i32
    return %c0_i32, %c0_i32_0 : i32, i32
  }
  func.func @transform_2(%arg0: i32) -> (i32, i32) {
    %c0_i32 = arith.constant 0 : i32
    %c0_i32_0 = arith.constant 0 : i32
    %c0_i32_1 = arith.constant 0 : i32
    return %c0_i32, %c0_i32_0 : i32, i32
  }
  func.func @transform_3(%arg0: i32) -> (i32, i32) {
    %c0_i32 = arith.constant 0 : i32
    %c0_i32_0 = arith.constant 0 : i32
    return %arg0, %c0_i32 : i32, i32
  }
}

</mosaic_0001>

<bundles_post_ra>
// kernel: tpu_custom_call.1
= control target key start
LH: loop header
LB: loop body
LE: loop exit
PB: predicated region body
PF: predicated region fallthrough
CT: control target
= control target key end

     0   :  { %8 = vsyncpa [#allocation3], 0  ;;  %s340_s0 = inlined_call_operand.hbm [shape: f32[16,32], index: 0, kind: input, shape index: {}]   ;;  %s341_s1 = inlined_call_operand.hbm [shape: f32[32,32], index: 1, kind: input, shape index: {}]   ;;  %s342_s2 = inlined_call_operand.vmem [shape: f32[1,32], index: 2, kind: input, shape index: {}]   ;;  %s343_s3 = inlined_call_operand.hbm [shape: f32[16,32], index: 3, kind: output, shape index: {}]  }
   0x1   :  { %9 = vsyncpa [#allocation6], 0 }
   0x2   :  { %10 = vsyncpa [#allocation4], 0  ;;  %s263_s12 = smov [#allocation2]   ;;  %s191_s16 = scalar_lea.hbm %s340_s0, 256 }
   0x3   :  { %s16_s13 = sshll.u32 %s263_s12, 4  ;;  %p192_p0 = scmp.ne.s32.totalorder %s340_s0, %s191_s16  ;;  %s17_s13 = int_to_ptr.vmem [resolvable:$true] %s16_s13 }
   0x4   :  { %p195_p1 = scmp.lt.u32.totalorder %s191_s16, %s340_s0 }
   0x6   :  { %p197_p2 = pnand %p195_p1, %p192_p0 }
   0x8   :  { %200 = shalt.err (!%p197_p2)
}
   0x9   :  { %s201_s21 = scalar_lea.vmem %s17_s13, 256  ;;  %p206_p4 = scmp.lt.s32.totalorder %s17_s13, %s17_s13 }
   0xa   :  { %p202_p3 = scmp.ne.s32.totalorder %s17_s13, %s201_s21  ;;  %p207_p5 = scmp.lt.s32.totalorder %s201_s21, %s201_s21 }
   0xc   :  { %p208_p6 = por %p207_p5, %p206_p4 }
   0xe   :  { %p209_p7 = pnand %p208_p6, %p202_p3 }
  0x10   :  { %212 = shalt.err (!%p209_p7)
}
  0x11   :  { %s264_s22 = smov 128   ;;  %s265_s23 = smov 8  }
  0x12   :  { %22 = dma.hbm_to_vmem [thread:$0]  %s340_s0, 256, %s17_s13, [#allocation3], %s264_s22, %s264_s22, %s265_s23  }
  0x13   :  { %s266_s26 = smov [#allocation5]   ;;  %s213_s30 = scalar_lea.hbm %s341_s1, 512 }
  0x14   :  { %s28_s27 = sshll.u32 %s266_s26, 4  ;;  %p214_p8 = scmp.ne.s32.totalorder %s341_s1, %s213_s30  ;;  %s29_s27 = int_to_ptr.vmem [resolvable:$true] %s28_s27 }
  0x15   :  { %p217_p9 = scmp.lt.u32.totalorder %s213_s30, %s341_s1 }
  0x17   :  { %p219_p10 = pnand %p217_p9, %p214_p8 }
  0x19   :  { %222 = shalt.err (!%p219_p10)
}
  0x1a   :  { %s223_s8 = scalar_lea.vmem %s29_s27, 512  ;;  %p228_p12 = scmp.lt.s32.totalorder %s29_s27, %s29_s27 }
  0x1b   :  { %p224_p11 = scmp.ne.s32.totalorder %s29_s27, %s223_s8  ;;  %p229_p13 = scmp.lt.s32.totalorder %s223_s8, %s223_s8 }
  0x1d   :  { %p230_p0 = por %p229_p13, %p228_p12 }
  0x1f   :  { %p231_p1 = pnand %p230_p0, %p224_p11 }
  0x21   :  { %234 = shalt.err (!%p231_p1)
}
  0x22   :  { %34 = dma.hbm_to_vmem [thread:$0]  %s341_s1, 512, %s29_s27, [#allocation6], %s264_s22, %s264_s22, %s265_s23  }
  0x23   :  { %257 = dma.done.wait [#allocation3], 256  }
  0x24   :  { %258 = vsyncadd [#allocation3], 4294967040 }
  0x25   :  { %259 = dma.done.wait [#allocation6], 512  }
  0x26   :  { %260 = vsyncadd [#allocation6], 4294966784  ;;  %vm56_vm0 = vcmask 261120   ;;  %v45_v0 = vld [vmem:[#allocation5] sm:$0xff]  ;;  %v46_v1 = vld [vmem:[#allocation5 + $0x8] sm:$0xff]  ;;  %s267_s11 = smov [#allocation7]  }
  0x27   :  { %v47_v2 = vld [vmem:[#allocation5 + $0x10] sm:$0xff]  ;;  %v178_v3 = vpack.c.bf16 %v46_v1, %v45_v0  ;;  %v48_v4 = vld [vmem:[#allocation5 + $0x18] sm:$0xff]  ;;  %s145_s12 = sshll.u32 %s267_s11, 4  ;;  %s146_s12 = int_to_ptr.vmem [resolvable:$true] %s145_s12 }
  0x28   :  { %v43_v5 = vld [vmem:[#allocation2] sm:$0xff]  ;;  %v182_v6 = vpack.c.bf16 %v48_v4, %v47_v2  ;;  %v44_v7 = vld [vmem:[#allocation2 + $0x8] sm:$0xff]  ;;  %s235_s13 = scalar_lea.vmem %s146_s12, 256  ;;  %p240_p3 = scmp.lt.s32.totalorder %s146_s12, %s146_s12 }
  0x29   :  { %175 = vmatprep.mubr.msk.f32.mxu0 %vm56_vm0, %v43_v5  ;;  %179 = vmatprep.subr.bf16.mxu0 %v178_v3  ;;  %v158_v8 = vld [vmem:[%s342_s2] ss:$0 sm:$0xff]  ;;  %p236_p2 = scmp.ne.s32.totalorder %s146_s12, %s235_s13  ;;  %p241_p4 = scmp.lt.s32.totalorder %s235_s13, %s235_s13 }
  0x2a   :  { %181 = vmatpush3.bf16.msra.mxu0 %v178_v3 }
  0x2b   :  { %183 = vmatprep.subr.bf16.mxu0 %v182_v6  ;;  %p242_p5 = por %p241_p4, %p240_p3 }
  0x2d   :  { %p243_p6 = pnand %p242_p5, %p236_p2 }
  0x2e   :  { %185 = vmatpush3.bf16.msra.mxu0 %v182_v6 }
  0x31   :  { %176 = vmatmul.mubr.msk.f32.vlgmr.msra.gmra.mrb[0].mxu0 %vm56_vm0, %v44_v7 }
 0x104   :  { %v177_v9 = vpop.f32.mrb[0].mxu0 }
 0x105   :  { %v135_v10 = vadd.f32 %v177_v9, %v158_v8  ;;  %v129_v11 = vpop.f32.mrb[1].mxu0 }
 0x106   :  { %v130_v12 = vadd.f32 %v158_v8, %v129_v11 }
 0x107   :  { %139 = vst.msk [vmem:[#allocation7 + $0x8] sm:$0xff] %vm56_vm0, %v135_v10 }
 0x108   :  { %138 = vst.msk [vmem:[#allocation7] sm:$0xff] %vm56_vm0, %v130_v12 }
 0x109   :  { %246 = shalt.err (!%p243_p6)
}
 0x10a   :  { %s247_s15 = scalar_lea.hbm %s343_s3, 256 }
 0x10b   :  { %p248_p7 = scmp.ne.s32.totalorder %s343_s3, %s247_s15  ;;  %p251_p8 = scmp.lt.u32.totalorder %s247_s15, %s343_s3 }
 0x10d   :  { %p253_p9 = pnand %p251_p8, %p248_p7 }
 0x10f   :  { %256 = shalt.err (!%p253_p9)
}
 0x110   :  { %151 = dma.vmem_to_hbm [thread:$0]  %s146_s12, 256, %s343_s3, [#allocation4], %s264_s22, %s264_s22, %s265_s23  }
 0x111   :  { %261 = dma.done.wait [#allocation4], 256  }
 0x112   :  { %262 = vsyncadd [#allocation4], 4294967040 }
 0x113   :  { %155 = vsyncpa [#allocation3], 1 }
 0x114   :  { %156 = vsyncpa [#allocation6], 1 }
 0x115   :  { %157 = vsyncpa [#allocation4], 1 }

</bundles_post_ra>
